<compile_context>
chip_gen: v5e
topology: v5e:2x2
jax: 0.10.0
libtpu: 0.0.40
codegen_flags: <defaults>
</compile_context>

<pallas_src>
import jax
import jax.numpy as jnp
from jax.experimental import pallas as pl
from jax.experimental.pallas import tpu as pltpu

# ----------------------------- configuration -------------------------------
DIM = 32          # embedding dim per gene token
NUM_GENES = 8
BATCH = 2
EPS = 1e-5        # torch.nn.LayerNorm default


# ------------------------------ shared math ---------------------------------
def _ln(x, g, b):
    mu = jnp.mean(x, axis=-1, keepdims=True)
    xc = x - mu
    var = jnp.mean(xc * xc, axis=-1, keepdims=True)   # biased variance (torch)
    return xc * jax.lax.rsqrt(var + EPS) * g + b


# ------------------------------ fused kernel --------------------------------
def _rna_embedder_kernel(x_ref, g1_ref, b1_ref, w_ref, bw_ref,
                         g2_ref, b2_ref, cls_ref, pos_ref, o_ref):
    B = x_ref.shape[0]
    GD = w_ref.shape[1]               # num_genes * dim
    D = cls_ref.shape[-1]
    G = GD // D

    # 1) LayerNorm over the gene axis.
    xn = _ln(x_ref[...].astype(jnp.float32), g1_ref[...], b1_ref[...])    # (B, G)

    # 2) Single fused Linear(num_genes -> num_genes*dim): one MXU push,
    #    lane-dense N = G*D = 256.
    h = jnp.dot(xn, w_ref[...],
                preferred_element_type=jnp.float32) + bw_ref[...]          # (B, G*D)

    # 3) One grouped per-gene LayerNorm(dim) + positional embedding (gene part).
    pos = pos_ref[...]                                                     # (G+1, D)
    h3 = h.reshape(B, G, D)
    hn = _ln(h3, g2_ref[...], b2_ref[...]) + pos[1:][None]                 # (B, G, D)

    # 4) cls-token row (+ pos[0]); two contiguous stores into the fused,
    #    lane-dense (B, (G+1)*D) output slab.
    cls_row = jnp.broadcast_to(cls_ref[...] + pos[0:1, :], (B, D))         # (B, D)
    o_ref[:, 0:D] = cls_row.astype(o_ref.dtype)
    o_ref[:, D:] = hn.reshape(B, G * D).astype(o_ref.dtype)

    # TODO(synk): nn.Dropout(p=0.0) is identity at inference -- omitted.


def rna_embedder(params, x):
    """x: (batch, num_genes) -> tokens: (batch, num_genes + 1, dim)."""
    x = x.astype(jnp.float32)                 # force f32 LN statistics
    b, g = x.shape
    d = params["cls"].shape[-1]
    n_tok = g + 1

    vmem = pl.BlockSpec(memory_space=pltpu.MemorySpace.VMEM)

    bytes_in = 4 * (b * g + 2 * g + g * g * d + g * d + 2 * d + d + n_tok * d)
    bytes_out = 4 * b * n_tok * d
    cost = pl.CostEstimate(
        flops=2 * b * g * (g * d) + 10 * b * n_tok * d,
        transcendentals=b * n_tok,            # one rsqrt per normalized row
        bytes_accessed=bytes_in + bytes_out,
    )

    out2d = pl.pallas_call(
        _rna_embedder_kernel,
        out_shape=jax.ShapeDtypeStruct((b, n_tok * d), jnp.float32),
        in_specs=[vmem] * 9,
        out_specs=vmem,
        cost_estimate=cost,
    )(x, params["ln1_g"], params["ln1_b"], params["w2d"], params["b2d"],
      params["ln2_g"], params["ln2_b"], params["cls"], params["pos"])

    # Free row-major metadata reshape: column n*D + d <-> token n, feature d.
    return out2d.reshape(b, n_tok, d)


# ------------------------- pure-JAX reference (check) ------------------------
def rna_embedder_reference(params, x):
    b, g = x.shape
    d = params["cls"].shape[-1]
    xn = _ln(x.astype(jnp.float32), params["ln1_g"], params["ln1_b"])
    h = (xn @ params["w2d"] + params["b2d"]).reshape(b, g, d)
    hn = _ln(h, params["ln2_g"], params["ln2_b"])
    cls = jnp.broadcast_to(params["cls"][None], (b, 1, d))
    return jnp.concatenate([cls, hn], axis=1) + params["pos"][None]


# ------------------------------- parameter init ------------------------------
def init_params(key):
    ks = jax.random.split(key, 4)
    return dict(
        ln1_g=jnp.ones((1, NUM_GENES), jnp.float32),
        ln1_b=jnp.zeros((1, NUM_GENES), jnp.float32),
        # Linear(num_genes, dim*num_genes) weight stored 2-D as (in, out):
        # when porting a PyTorch checkpoint, w2d = W_torch.T
        # (i.e. w2d[k, g*DIM + d] = W_torch[g*DIM + d, k]) and b2d = bias[None].
        w2d=jax.random.normal(ks[0], (NUM_GENES, NUM_GENES * DIM), jnp.float32) * 0.02,
        b2d=jax.random.normal(ks[1], (1, NUM_GENES * DIM), jnp.float32) * 0.02,
        ln2_g=jnp.ones((1, DIM), jnp.float32),
        ln2_b=jnp.zeros((1, DIM), jnp.float32),
        cls=jax.random.normal(ks[2], (1, DIM), jnp.float32),
        pos=jax.random.normal(ks[3], (NUM_GENES + 1, DIM), jnp.float32),
    )


# ----------------------------------- main ------------------------------------
if __name__ == "__main__":
    key = jax.random.PRNGKey(0)
    kp, kx = jax.random.split(key)
    params = init_params(kp)
    x = jax.random.normal(kx, (BATCH, NUM_GENES), jnp.float32)

    fwd = jax.jit(rna_embedder)
    out = fwd(params, x)
    jax.block_until_ready(out)
    assert out.shape == (BATCH, NUM_GENES + 1, DIM)

    ref = rna_embedder_reference(params, x)
    assert jnp.allclose(out, ref, atol=1e-4, rtol=1e-4), "mismatch vs reference"
    print("KERNEL_OK")
</pallas_src>

<mosaic_0001>
module attributes {stable_mosaic.version = 11 : i64} {
  func.func @_rna_embedder_kernel(%arg0: memref<2x8xf32, #tpu.memory_space<vmem>>, %arg1: memref<1x8xf32, #tpu.memory_space<vmem>>, %arg2: memref<1x8xf32, #tpu.memory_space<vmem>>, %arg3: memref<8x256xf32, #tpu.memory_space<vmem>>, %arg4: memref<1x256xf32, #tpu.memory_space<vmem>>, %arg5: memref<1x32xf32, #tpu.memory_space<vmem>>, %arg6: memref<1x32xf32, #tpu.memory_space<vmem>>, %arg7: memref<1x32xf32, #tpu.memory_space<vmem>>, %arg8: memref<9x32xf32, #tpu.memory_space<vmem>>, %arg9: memref<2x288xf32, #tpu.memory_space<vmem>>) attributes {dimension_semantics = [], scalar_prefetch = 0 : i64, scratch_operands = 0 : i64, tpu.core_type = #tpu.core_type<tc>} {
    %c0 = arith.constant 0 : index
    %c0_0 = arith.constant 0 : index
    %0 = vector.load %arg0[%c0, %c0_0] : memref<2x8xf32, #tpu.memory_space<vmem>>, vector<2x8xf32>
    %c0_1 = arith.constant 0 : index
    %c0_2 = arith.constant 0 : index
    %1 = vector.load %arg1[%c0_1, %c0_2] : memref<1x8xf32, #tpu.memory_space<vmem>>, vector<1x8xf32>
    %c0_3 = arith.constant 0 : index
    %c0_4 = arith.constant 0 : index
    %2 = vector.load %arg2[%c0_3, %c0_4] : memref<1x8xf32, #tpu.memory_space<vmem>>, vector<1x8xf32>
    %cst = arith.constant dense<0.000000e+00> : vector<2xf32>
    %3 = vector.multi_reduction <add>, %0, %cst [1] : vector<2x8xf32> to vector<2xf32>
    %4 = vector.shape_cast %3 : vector<2xf32> to vector<2x1xf32>
    %cst_5 = arith.constant 8.000000e+00 : f32
    %5 = vector.broadcast %cst_5 : f32 to vector<2x1xf32>
    %6 = arith.divf %4, %5 : vector<2x1xf32>
    %7 = vector.broadcast %6 : vector<2x1xf32> to vector<2x8xf32>
    %8 = arith.subf %0, %7 : vector<2x8xf32>
    %9 = arith.mulf %8, %8 : vector<2x8xf32>
    %cst_6 = arith.constant dense<0.000000e+00> : vector<2xf32>
    %10 = vector.multi_reduction <add>, %9, %cst_6 [1] : vector<2x8xf32> to vector<2xf32>
    %11 = vector.shape_cast %10 : vector<2xf32> to vector<2x1xf32>
    %cst_7 = arith.constant 8.000000e+00 : f32
    %12 = vector.broadcast %cst_7 : f32 to vector<2x1xf32>
    %13 = arith.divf %11, %12 : vector<2x1xf32>
    %cst_8 = arith.constant 9.99999974E-6 : f32
    %14 = vector.broadcast %cst_8 : f32 to vector<2x1xf32>
    %15 = arith.addf %13, %14 : vector<2x1xf32>
    %16 = math.rsqrt %15 : vector<2x1xf32>
    %17 = vector.broadcast %16 : vector<2x1xf32> to vector<2x8xf32>
    %18 = arith.mulf %8, %17 : vector<2x8xf32>
    %19 = vector.broadcast %1 : vector<1x8xf32> to vector<2x8xf32>
    %20 = arith.mulf %18, %19 : vector<2x8xf32>
    %21 = vector.broadcast %2 : vector<1x8xf32> to vector<2x8xf32>
    %22 = arith.addf %20, %21 : vector<2x8xf32>
    %c0_9 = arith.constant 0 : index
    %c0_10 = arith.constant 0 : index
    %23 = vector.load %arg3[%c0_9, %c0_10] : memref<8x256xf32, #tpu.memory_space<vmem>>, vector<8x256xf32>
    %cst_11 = arith.constant dense<0.000000e+00> : vector<2x256xf32>
    %24 = tpu.matmul %22, %23, %cst_11 {dimension_numbers = #tpu.dot_dimension_numbers<[1], [0], [0], [1], [0, 0, 1, 1], [], []>} : vector<2x8xf32>, vector<8x256xf32>, vector<2x256xf32> -> vector<2x256xf32>
    %c0_12 = arith.constant 0 : index
    %c0_13 = arith.constant 0 : index
    %25 = vector.load %arg4[%c0_12, %c0_13] : memref<1x256xf32, #tpu.memory_space<vmem>>, vector<1x256xf32>
    %26 = vector.broadcast %25 : vector<1x256xf32> to vector<2x256xf32>
    %27 = arith.addf %24, %26 : vector<2x256xf32>
    %c0_14 = arith.constant 0 : index
    %c0_15 = arith.constant 0 : index
    %28 = vector.load %arg8[%c0_14, %c0_15] : memref<9x32xf32, #tpu.memory_space<vmem>>, vector<9x32xf32>
    %29 = vector.shape_cast %27 : vector<2x256xf32> to vector<2x8x32xf32>
    %c0_16 = arith.constant 0 : index
    %c0_17 = arith.constant 0 : index
    %30 = vector.load %arg5[%c0_16, %c0_17] : memref<1x32xf32, #tpu.memory_space<vmem>>, vector<1x32xf32>
    %c0_18 = arith.constant 0 : index
    %c0_19 = arith.constant 0 : index
    %31 = vector.load %arg6[%c0_18, %c0_19] : memref<1x32xf32, #tpu.memory_space<vmem>>, vector<1x32xf32>
    %cst_20 = arith.constant dense<0.000000e+00> : vector<2x8xf32>
    %32 = vector.multi_reduction <add>, %29, %cst_20 [2] : vector<2x8x32xf32> to vector<2x8xf32>
    %33 = vector.shape_cast %32 : vector<2x8xf32> to vector<2x8x1xf32>
    %cst_21 = arith.constant 3.200000e+01 : f32
    %34 = vector.broadcast %cst_21 : f32 to vector<2x8x1xf32>
    %35 = arith.divf %33, %34 : vector<2x8x1xf32>
    %36 = vector.broadcast %35 : vector<2x8x1xf32> to vector<2x8x32xf32>
    %37 = arith.subf %29, %36 : vector<2x8x32xf32>
    %38 = arith.mulf %37, %37 : vector<2x8x32xf32>
    %cst_22 = arith.constant dense<0.000000e+00> : vector<2x8xf32>
    %39 = vector.multi_reduction <add>, %38, %cst_22 [2] : vector<2x8x32xf32> to vector<2x8xf32>
    %40 = vector.shape_cast %39 : vector<2x8xf32> to vector<2x8x1xf32>
    %cst_23 = arith.constant 3.200000e+01 : f32
    %41 = vector.broadcast %cst_23 : f32 to vector<2x8x1xf32>
    %42 = arith.divf %40, %41 : vector<2x8x1xf32>
    %cst_24 = arith.constant 9.99999974E-6 : f32
    %43 = vector.broadcast %cst_24 : f32 to vector<2x8x1xf32>
    %44 = arith.addf %42, %43 : vector<2x8x1xf32>
    %45 = math.rsqrt %44 : vector<2x8x1xf32>
    %46 = vector.broadcast %45 : vector<2x8x1xf32> to vector<2x8x32xf32>
    %47 = arith.mulf %37, %46 : vector<2x8x32xf32>
    %48 = vector.shape_cast %30 : vector<1x32xf32> to vector<1x1x32xf32>
    %49 = vector.broadcast %48 : vector<1x1x32xf32> to vector<2x8x32xf32>
    %50 = arith.mulf %47, %49 : vector<2x8x32xf32>
    %51 = vector.shape_cast %31 : vector<1x32xf32> to vector<1x1x32xf32>
    %52 = vector.broadcast %51 : vector<1x1x32xf32> to vector<2x8x32xf32>
    %53 = arith.addf %50, %52 : vector<2x8x32xf32>
    %54 = vector.extract_strided_slice %28 {offsets = [1, 0], sizes = [8, 32], strides = [1, 1]} : vector<9x32xf32> to vector<8x32xf32>
    %55 = vector.shape_cast %54 : vector<8x32xf32> to vector<1x8x32xf32>
    %56 = vector.broadcast %55 : vector<1x8x32xf32> to vector<2x8x32xf32>
    %57 = arith.addf %53, %56 : vector<2x8x32xf32>
    %c0_25 = arith.constant 0 : index
    %c0_26 = arith.constant 0 : index
    %58 = vector.load %arg7[%c0_25, %c0_26] : memref<1x32xf32, #tpu.memory_space<vmem>>, vector<1x32xf32>
    %59 = vector.extract_strided_slice %28 {offsets = [0, 0], sizes = [1, 32], strides = [1, 1]} : vector<9x32xf32> to vector<1x32xf32>
    %60 = arith.addf %58, %59 : vector<1x32xf32>
    %61 = vector.shape_cast %60 : vector<1x32xf32> to vector<1x32xf32>
    %62 = vector.broadcast %61 : vector<1x32xf32> to vector<2x32xf32>
    %c0_27 = arith.constant 0 : index
    %c0_28 = arith.constant 0 : index
    %63 = vector.load %arg9[%c0_27, %c0_28] : memref<2x288xf32, #tpu.memory_space<vmem>>, vector<2x32xf32>
    tpu.vector_store %arg9[%c0_27, %c0_28], %62 {strides = array<i32>} : memref<2x288xf32, #tpu.memory_space<vmem>>, vector<2x32xf32>,
    %64 = vector.shape_cast %57 : vector<2x8x32xf32> to vector<2x256xf32>
    %c0_29 = arith.constant 0 : index
    %c32 = arith.constant 32 : index
    %65 = vector.load %arg9[%c0_29, %c32] : memref<2x288xf32, #tpu.memory_space<vmem>>, vector<2x256xf32>
    tpu.vector_store %arg9[%c0_29, %c32], %64 {strides = array<i32>} : memref<2x288xf32, #tpu.memory_space<vmem>>, vector<2x256xf32>,
    return
  }
}

</mosaic_0001>

<bundles_post_ra>
// kernel: rna_embedder.1
= control target key start
LH: loop header
LB: loop body
LE: loop exit
PB: predicated region body
PF: predicated region fallthrough
CT: control target
= control target key end

     0   :  { %14 = vsyncpa [#allocation3], 0  ;;  %s799_s0 = inlined_call_operand.vmem [shape: f32[2,8], index: 0, kind: input, shape index: {}]   ;;  %s800_s1 = inlined_call_operand.vmem [shape: f32[1,8], index: 1, kind: input, shape index: {}]   ;;  %s801_s2 = inlined_call_operand.hbm [shape: f32[1,8], index: 2, kind: input, shape index: {}]   ;;  %s802_s3 = inlined_call_operand.hbm [shape: f32[8,256], index: 3, kind: input, shape index: {}]   ;;  %s803_s4 = inlined_call_operand.hbm [shape: f32[1,256], index: 4, kind: input, shape index: {}]   ;;  %s804_s5 = inlined_call_operand.vmem [shape: f32[1,32], index: 5, kind: input, shape index: {}]   ;;  %s805_s6 = inlined_call_operand.hbm [shape: f32[1,32], index: 6, kind: input, shape index: {}]   ;;  %s806_s7 = inlined_call_operand.hbm [shape: f32[1,32], index: 7, kind: input, shape index: {}]   ;;  %s807_s8 = inlined_call_operand.hbm [shape: f32[9,32], index: 8, kind: input, shape index: {}]   ;;  %s808_s9 = inlined_call_operand.vmem [shape: f32[2,288], index: 9, kind: output, shape index: {}]  }
   0x1   :  { %15 = vsyncpa [#allocation5], 0 }
   0x2   :  { %16 = vsyncpa [#allocation8], 0  ;;  %s38_s11 = sshll.u32 %s802_s3, 4  ;;  %s39_s11 = int_to_ptr.hbm [resolvable:$true] %s38_s11 }
   0x3   :  { %17 = vsyncpa [#allocation11], 0  ;;  %s643_s12 = smov [#allocation4]   ;;  %s62_s16 = sshll.u32 %s805_s6, 4  ;;  %s63_s16 = int_to_ptr.hbm [resolvable:$true] %s62_s16 }
   0x4   :  { %s40_s13 = sshll.u32 %s643_s12, 4  ;;  %s644_s17 = smov [#allocation7]   ;;  %s41_s13 = int_to_ptr.vmem [resolvable:$true] %s40_s13 }
   0x5   :  { %43 = dma.hbm_to_vmem [thread:$0]  %s39_s11, 256, %s41_s13, [#allocation5]  }
   0x6   :  { %s64_s18 = sshll.u32 %s644_s17, 4  ;;  %s27_s21 = sshll.u32 %s801_s2, 4  ;;  %s65_s18 = int_to_ptr.vmem [resolvable:$true] %s64_s18  ;;  %s28_s21 = int_to_ptr.hbm [resolvable:$true] %s27_s21 }
   0x7   :  { %67 = dma.hbm_to_vmem [thread:$0]  %s63_s16, 16, %s65_s18, [#allocation8]  }
   0x8   :  { %s49_s23 = sshll.u32 %s803_s4, 4  ;;  %s645_s24 = smov [#allocation2]   ;;  %s50_s23 = int_to_ptr.hbm [resolvable:$true] %s49_s23 }
   0x9   :  { %s29_s25 = sshll.u32 %s645_s24, 4  ;;  %s646_s6 = smov [#allocation6]   ;;  %s30_s25 = int_to_ptr.vmem [resolvable:$true] %s29_s25 }
   0xa   :  { %32 = dma.hbm_to_vmem [thread:$0]  %s28_s21, 16, %s30_s25, [#allocation3]  }
   0xb   :  { %s51_s26 = sshll.u32 %s646_s6, 4  ;;  %s73_s29 = sshll.u32 %s806_s7, 4  ;;  %s52_s26 = int_to_ptr.vmem [resolvable:$true] %s51_s26  ;;  %s74_s29 = int_to_ptr.hbm [resolvable:$true] %s73_s29 }
   0xc   :  { %54 = dma.hbm_to_vmem [thread:$0]  %s50_s23, 32, %s52_s26, [#allocation5]  }
   0xd   :  { %s83_s10 = sshll.u32 %s807_s8, 4  ;;  %s647_s11 = smov [#allocation9]   ;;  %s84_s10 = int_to_ptr.hbm [resolvable:$true] %s83_s10 }
   0xe   :  { %s75_s4 = sshll.u32 %s647_s11, 4  ;;  %s648_s12 = smov [#allocation10]   ;;  %s76_s4 = int_to_ptr.vmem [resolvable:$true] %s75_s4 }
   0xf   :  { %78 = dma.hbm_to_vmem [thread:$0]  %s74_s29, 16, %s76_s4, [#allocation8]  }
  0x10   :  { %s85_s13 = sshll.u32 %s648_s12, 4  ;;  %s649_s14 = smov 128   ;;  %s86_s13 = int_to_ptr.vmem [resolvable:$true] %s85_s13 }
  0x11   :  { %s650_s15 = smov 8  }
  0x12   :  { %91 = dma.hbm_to_vmem [thread:$0]  %s84_s10, 256, %s86_s13, [#allocation11], %s649_s14, %s649_s14, %s650_s15  }
  0x13   :  { %635 = dma.done.wait [#allocation3], 16  }
  0x14   :  { %636 = vsyncadd [#allocation3], 4294967280 }
  0x15   :  { %637 = dma.done.wait [#allocation5], 288  }
  0x16   :  { %638 = vsyncadd [#allocation5], 4294967008 }
  0x17   :  { %639 = dma.done.wait [#allocation8], 32  }
  0x18   :  { %640 = vsyncadd [#allocation8], 4294967264 }
  0x19   :  { %641 = dma.done.wait [#allocation11], 256  }
  0x1a   :  { %642 = vsyncadd [#allocation11], 4294967040  ;;  %vm119_vm0 = vcmask 58368   ;;  %v116_v0 = vld [vmem:[%s799_s0] sm:$0x3]  ;;  %v651_v2 = vmov 8.0  }
  0x1b   :  { %v120_v1 = vsel %vm119_vm0, %v116_v0, 0.0  ;;  %481 = vrcp.f32 %v651_v2  ;;  %v157_v14 = vld [vmem:[#allocation4] sm:$0xff]  ;;  %v158_v15 = vld [vmem:[#allocation4 + $0x8] sm:$0xff]  ;;  %v477_v25 = vld [vmem:[%s800_s1] ss:$0 sm:$0xff]  ;;  %vm165_vm5 = vcmask 64512  }
  0x1c   :  { %121 = vadd.xlane.f32.xlu0 %v120_v1  ;;  %184 = vmatpush.msra.mxu0 %v157_v14  ;;  %v478_v28 = vld [vmem:[#allocation2] ss:$0 sm:$0xff]  ;;  %v159_v31 = vld [vmem:[#allocation6] sm:$0x3]  ;;  %s652_s17 = smov 96   ;;  %s653_s18 = smov 64  }
  0x1d   :  { %204 = vmatpush.msra.mxu1 %v158_v15  ;;  %v161_v32 = vperm.slane %v159_v31, 0  ;;  %v162_v33 = vperm.slane %v159_v31, 1  ;;  %s654_s1 = smov 32   ;;  %v655_v40 = vmov 1983009808   ;;  %vm232_vm6 = vcmask 1047556  }
  0x1e   :  { %v235_v41 = vunpack.c.l.s4 %v655_v40  ;;  %v656_v52 = vmov 1934713408   ;;  %vm274_vm7 = vcmask 261120   ;;  %vm338_vm15 = vcmask 1046528  }
  0x1f   :  { %v259_v53 = vunpack.c.l.s4 %v656_v52  ;;  %v480_v52 = vld [vmem:[#allocation7] ss:$0 sm:$0xff] }
  0x20   :  { %v740_v44 = vunpack.c.0.s8 %v235_v41 }
  0x21   :  { %v482_v3 = vpop.eup %481  ;;  %v747_v57 = vunpack.c.0.s8 %v259_v53 }
  0x22   :  { %v124_v4 = vmul.f32 8.0, %v482_v3  ;;  %vm128_vm1 = vweird.f32 %v482_v3 }
  0x24   :  { %v125_v5 = vsub.f32 1.0, %v124_v4 }
  0x26   :  { %v126_v6 = vmul.f32 %v482_v3, %v125_v5 }
  0x28   :  { %v127_v7 = vadd.f32 %v482_v3, %v126_v6 }
  0x2a   :  { %v129_v8 = vsel %vm128_vm1, %v482_v3, %v127_v7  ;;  %vm429_vm1 = vcmask 523264  }
  0x8f   :  { %v122_v9 = vpop.xlane.xlu0 %121 }
  0x90   :  { %v130_v10 = vmul.f32 %v129_v8, %v122_v9 }
  0x92   :  { %v131_v11 = vsub.f32 %v116_v0, %v130_v10  ;;  %v657_v10 = vmov 32.0  }
  0x94   :  { %v132_v12 = vmul.f32 %v131_v11, %v131_v11 }
  0x96   :  { %v133_v13 = vsel %vm119_vm0, %v132_v12, 0.0  ;;  %vm350_vm0 = vcmask 254976  }
  0x97   :  { %134 = vadd.xlane.f32.xlu0 %v133_v13 }
 0x10a   :  { %v135_v16 = vpop.xlane.xlu0 %134 }
 0x10b   :  { %v136_v17 = vmul.f32 %v135_v16, %v129_v8 }
 0x10d   :  { %v137_v18 = vadd.f32 1e-05, %v136_v17 }
 0x10f   :  { %483 = vrsqrt.f32 %v137_v18  ;;  %vm144_vm3 = vweird.f32 %v137_v18 }
 0x110   :  { %485 = vrcp.f32 %v657_v10 }
 0x115   :  { %v484_v19 = vpop.eup %483 }
 0x116   :  { %v139_v20 = vmul.f32 %v484_v19, %v137_v18  ;;  %vm145_vm2 = vweird.f32 %v484_v19 }
 0x117   :  { %vm146_vm4 = vmor %vm144_vm3, %vm145_vm2  ;;  %vm431_vm2 = vcmask 785408   ;;  %vm439_vm3 = vcmask 1041408  }
 0x118   :  { %v140_v21 = vmul.f32 %v484_v19, %v139_v20 }
 0x11a   :  { %v141_v22 = vmul.f32 0.5, %v140_v21 }
 0x11c   :  { %v142_v23 = vsub.f32 1.5, %v141_v22 }
 0x11e   :  { %v143_v24 = vmul.f32 %v484_v19, %v142_v23 }
 0x120   :  { %v147_v26 = vsel %vm146_vm4, %v484_v19, %v143_v24  ;;  %vm446_vm4 = vcmask 1041664  }
 0x121   :  { %v148_v27 = vmul.f32 %v147_v26, %v131_v11  ;;  %v486_v11 = vpop.eup %485 }
 0x122   :  { %v282_v12 = vmul.f32 32.0, %v486_v11  ;;  %vm286_vm8 = vweird.f32 %v486_v11 }
 0x123   :  { %v152_v29 = vmul.f32 %v477_v25, %v148_v27 }
 0x124   :  { %v283_v13 = vsub.f32 1.0, %v282_v12 }
 0x125   :  { %v156_v30 = vadd.f32 %v478_v28, %v152_v29 }
 0x126   :  { %v284_v14 = vmul.f32 %v486_v11, %v283_v13 }
 0x127   :  { %460 = vmatmul.msk.f32.vlgmr.msra.gmra.mxu0 %vm165_vm5, %v156_v30  ;;  %461 = vmatmul.msk.f32.vlgmr.msra.gmra.mxu1 %vm165_vm5, %v156_v30  ;;  %vm447_vm5 = vcmask 1043458  }
 0x128   :  { %v285_v15 = vadd.f32 %v486_v11, %v284_v14 }
 0x12a   :  { %v287_v16 = vsel %vm286_vm8, %v486_v11, %v285_v15  ;;  %vm449_vm8 = vcmask 259076  }
 0x1a4   :  { %v186_v34 = vpop.f32.mrf.mxu0  ;;  %v206_v35 = vpop.f32.mrf.mxu1 }
 0x1a5   :  { %v187_v36 = vadd.f32 %v186_v34, %v161_v32  ;;  %v207_v37 = vadd.f32 %v206_v35, %v162_v33 }
 0x1a7   :  { %222 = vrot.lane.b32.xlu0 %v207_v37, %s652_s17  ;;  %215 = vrot.lane.b32.xlu2 %v187_v36, %s653_s18 }
 0x1a8   :  { %218 = vrot.lane.b32.xlu1 %v187_v36, %s654_s1 }
 0x1af   :  { %228 = vrot.lane.b32.xlu2 %v207_v37, %s654_s1 }
 0x1b0   :  { %212 = vrot.lane.b32.xlu1 %v187_v36, %s652_s17 }
 0x1b8   :  { %225 = vrot.lane.b32.xlu1 %v207_v37, %s653_s18 }
 0x201   :  { %v216_v38 = vpop.permute.xlu2 %215 }
 0x202   :  { %v231_v42 = vrot.slane %v216_v38, 4 }
 0x204   :  { %v233_v50 = vsel %vm232_vm6, %v231_v42, %v187_v36  ;;  %v209_v42 = vld [vmem:[#allocation10] sm:$0xff] }
 0x205   :  { %v237_v56 = vperm.slane %v233_v50, %v740_v44 }
 0x209   :  { %v229_v45 = vpop.permute.xlu2 %228 }
 0x20a   :  { %v250_v51 = vrot.slane %v229_v45, 4 }
 0x219   :  { %v223_v48 = vpop.permute.xlu0 %222 }
 0x21a   :  { %v219_v39 = vpop.permute.xlu1 %218  ;;  %v251_v55 = vsel %vm232_vm6, %v250_v51, %v223_v48  ;;  %v339_v48 = vrot.slane %v209_v42, 1 }
 0x21b   :  { %v238_v43 = vrot.slane %v219_v39, 4  ;;  %v255_v58 = vperm.slane %v251_v55, %v740_v44 }
 0x21d   :  { %v262_v0 = vrot.slane %v255_v58, 4 }
 0x222   :  { %v213_v46 = vpop.permute.xlu1 %212 }
 0x223   :  { %v239_v47 = vsel %vm232_vm6, %v238_v43, %v213_v46  ;;  %v210_v43 = vld [vmem:[#allocation10 + $0x8] sm:$0x1] }
 0x224   :  { %v243_v49 = vperm.slane %v239_v47, %v740_v44  ;;  %v479_v47 = vld [vmem:[%s804_s5] ss:$0 sm:$0xff]  ;;  %v340_v51 = vrot.slane %v210_v43, 1 }
 0x226   :  { %v256_v54 = vrot.slane %v243_v49, 4  ;;  %v341_v58 = vsel %vm338_vm15, %v339_v48, %v340_v51 }
 0x228   :  { %v257_v59 = vsel %vm232_vm6, %v256_v54, %v237_v56 }
 0x229   :  { %v261_v63 = vperm.slane %v257_v59, %v747_v57 }
 0x22a   :  { %v226_v60 = vpop.permute.xlu1 %225 }
 0x22b   :  { %v244_v61 = vrot.slane %v226_v60, 4  ;;  %v270_v4 = vrot.slane %v261_v63, 4 }
 0x22d   :  { %v245_v62 = vsel %vm232_vm6, %v244_v61, %v207_v37 }
 0x22e   :  { %v249_v1 = vperm.slane %v245_v62, %v740_v44 }
 0x230   :  { %v263_v2 = vsel %vm232_vm6, %v262_v0, %v249_v1 }
 0x231   :  { %v267_v3 = vperm.slane %v263_v2, %v747_v57 }
 0x233   :  { %v271_v5 = vsel %vm232_vm6, %v267_v3, %v270_v4  ;;  %v268_v6 = vrot.slane %v267_v3, 4 }
 0x234   :  { %v278_v7 = vsel %vm274_vm7, %v271_v5, 0.0 }
 0x235   :  { %279 = vadd.xlane.f32.xlu2 %v278_v7  ;;  %v269_v8 = vsel %vm232_vm6, %v268_v6, %v261_v63 }
 0x236   :  { %v275_v9 = vsel %vm274_vm7, %v269_v8, 0.0 }
 0x237   :  { %276 = vadd.xlane.f32.xlu1 %v275_v9 }
 0x2a8   :  { %v280_v17 = vpop.xlane.xlu2 %279 }
 0x2a9   :  { %v289_v18 = vmul.f32 %v287_v16, %v280_v17 }
 0x2aa   :  { %v277_v19 = vpop.xlane.xlu1 %276 }
 0x2ab   :  { %v291_v20 = vsub.f32 %v271_v5, %v289_v18  ;;  %v288_v21 = vmul.f32 %v287_v16, %v277_v19 }
 0x2ad   :  { %v290_v22 = vsub.f32 %v269_v8, %v288_v21  ;;  %v293_v23 = vmul.f32 %v291_v20, %v291_v20 }
 0x2af   :  { %v297_v24 = vsel %vm274_vm7, %v293_v23, 0.0  ;;  %v292_v25 = vmul.f32 %v290_v22, %v290_v22 }
 0x2b0   :  { %298 = vadd.xlane.f32.xlu0 %v297_v24 }
 0x2b1   :  { %v294_v26 = vsel %vm274_vm7, %v292_v25, 0.0 }
 0x2b2   :  { %295 = vadd.xlane.f32.xlu2 %v294_v26 }
 0x323   :  { %v299_v27 = vpop.xlane.xlu0 %298 }
 0x324   :  { %v301_v28 = vmul.f32 %v299_v27, %v287_v16  ;;  %v345_v27 = vld [vmem:[#allocation9] sm:$0x1] }
 0x325   :  { %v296_v29 = vpop.xlane.xlu2 %295 }
 0x326   :  { %v303_v30 = vadd.f32 1e-05, %v301_v28  ;;  %v300_v31 = vmul.f32 %v296_v29, %v287_v16  ;;  %v346_v28 = vadd.f32 %v345_v27, %v209_v42 }
 0x328   :  { %487 = vrsqrt.f32 %v303_v30  ;;  %v302_v32 = vadd.f32 1e-05, %v300_v31  ;;  %vm320_vm10 = vweird.f32 %v303_v30  ;;  %v348_v29 = vperm.slane %v346_v28, 0 }
 0x32a   :  { %489 = vrsqrt.f32 %v302_v32  ;;  %vm310_vm13 = vweird.f32 %v302_v32  ;;  %351 = vst.msk [vmem:[%s808_s9] sm:$0x3] %vm350_vm0, %v348_v29 }
 0x32e   :  { %v488_v33 = vpop.eup %487 }
 0x32f   :  { %v315_v34 = vmul.f32 %v488_v33, %v303_v30  ;;  %vm321_vm9 = vweird.f32 %v488_v33 }
 0x330   :  { %v490_v35 = vpop.eup %489  ;;  %vm322_vm12 = vmor %vm320_vm10, %vm321_vm9 }
 0x331   :  { %v316_v36 = vmul.f32 %v488_v33, %v315_v34  ;;  %v305_v37 = vmul.f32 %v490_v35, %v302_v32  ;;  %vm311_vm11 = vweird.f32 %v490_v35 }
 0x332   :  { %vm312_vm14 = vmor %vm310_vm13, %vm311_vm11 }
 0x333   :  { %v317_v38 = vmul.f32 0.5, %v316_v36  ;;  %v306_v39 = vmul.f32 %v490_v35, %v305_v37 }
 0x335   :  { %v318_v40 = vsub.f32 1.5, %v317_v38  ;;  %v307_v41 = vmul.f32 0.5, %v306_v39 }
 0x337   :  { %v319_v45 = vmul.f32 %v488_v33, %v318_v40  ;;  %v308_v46 = vsub.f32 1.5, %v307_v41 }
 0x339   :  { %v323_v49 = vsel %vm322_vm12, %v488_v33, %v319_v45  ;;  %v309_v50 = vmul.f32 %v490_v35, %v308_v46 }
 0x33a   :  { %v325_v53 = vmul.f32 %v323_v49, %v291_v20 }
 0x33b   :  { %v313_v54 = vsel %vm312_vm14, %v490_v35, %v309_v50 }
 0x33c   :  { %v330_v55 = vmul.f32 %v479_v47, %v325_v53  ;;  %v324_v56 = vmul.f32 %v313_v54, %v290_v22 }
 0x33e   :  { %v335_v59 = vadd.f32 %v480_v52, %v330_v55  ;;  %v329_v60 = vmul.f32 %v479_v47, %v324_v56 }
 0x340   :  { %v334_v61 = vadd.f32 %v480_v52, %v329_v60  ;;  %v344_v62 = vadd.f32 %v341_v58, %v335_v59 }
 0x342   :  { %v343_v63 = vadd.f32 %v341_v58, %v334_v61  ;;  %v367_v0 = vperm.slane %v344_v62, %v740_v44  ;;  %v362_v1 = vrot.slane %v344_v62, 4 }
 0x344   :  { %v357_v2 = vperm.slane %v343_v63, %v740_v44  ;;  %v372_v3 = vrot.slane %v367_v0, 4  ;;  %v352_v4 = vrot.slane %v343_v63, 4  ;;  %v363_v5 = vsel %vm232_vm6, 0.0, %v362_v1 }
 0x345   :  { %v371_v6 = vperm.slane %v363_v5, %v740_v44 }
 0x346   :  { %v373_v7 = vsel %vm232_vm6, %v372_v3, %v357_v2  ;;  %v353_v8 = vsel %vm232_vm6, 0.0, %v352_v4  ;;  %v374_v20 = vrot.slane %v357_v2, 4 }
 0x347   :  { %v379_v9 = vperm.slane %v373_v7, %v747_v57  ;;  %v361_v10 = vperm.slane %v353_v8, %v740_v44  ;;  %v384_v11 = vrot.slane %v371_v6, 4 }
 0x348   :  { %v375_v21 = vsel %vm232_vm6, %v367_v0, %v374_v20 }
 0x349   :  { %v396_v12 = vrot.slane %v379_v9, 4  ;;  %v386_v13 = vrot.slane %v361_v10, 4  ;;  %v385_v14 = vsel %vm232_vm6, %v384_v11, %v361_v10  ;;  %v383_v23 = vperm.slane %v375_v21, %v747_v57 }
 0x34a   :  { %v391_v15 = vperm.slane %v385_v14, %v747_v57 }
 0x34b   :  { %v397_v16 = vsel %vm232_vm6, 0.0, %v396_v12  ;;  %v387_v17 = vsel %vm232_vm6, %v371_v6, %v386_v13  ;;  %v398_v25 = vrot.slane %v383_v23, 4 }
 0x34c   :  { %405 = vrot.lane.b32.xlu0 %v397_v16, %s654_s1  ;;  %v395_v18 = vperm.slane %v387_v17, %v747_v57  ;;  %v400_v19 = vrot.slane %v391_v15, 4 }
 0x34d   :  { %v399_v26 = vsel %vm232_vm6, 0.0, %v398_v25 }
 0x34e   :  { %421 = vrot.lane.b32.xlu1 %v395_v18, %s653_s18  ;;  %v401_v44 = vsel %vm232_vm6, 0.0, %v400_v19  ;;  %v402_v22 = vrot.slane %v395_v18, 4 }
 0x34f   :  { %417 = vrot.lane.b32.xlu2 %v401_v44, %s654_s1 }
 0x350   :  { %v403_v24 = vsel %vm232_vm6, 0.0, %v402_v22  ;;  %vm448_vm6 = vmor %vm447_vm5, %vm446_vm4 }
 0x351   :  { %vm450_vm9 = vmor %vm449_vm8, %vm448_vm6 }
 0x356   :  { %409 = vrot.lane.b32.xlu1 %v383_v23, %s653_s18 }
 0x357   :  { %425 = vrot.lane.b32.xlu2 %v403_v24, %s652_s17 }
 0x35f   :  { %413 = vrot.lane.b32.xlu2 %v399_v26, %s652_s17 }
 0x3a9   :  { %v418_v57 = vpop.permute.xlu2 %417 }
 0x3aa   :  { %v433_v32 = vsel %vm274_vm7, %v391_v15, %v418_v57 }
 0x3b1   :  { %v426_v30 = vpop.permute.xlu2 %425 }
 0x3b9   :  { %v414_v38 = vpop.permute.xlu2 %413 }
 0x3be   :  { %v406_v34 = vpop.permute.xlu0 %405 }
 0x3bf   :  { %v428_v36 = vsel %vm274_vm7, %v379_v9, %v406_v34 }
 0x3c0   :  { %v422_v31 = vpop.permute.xlu1 %421 }
 0x3c1   :  { %v434_v33 = vsel %vm429_vm1, %v433_v32, %v422_v31 }
 0x3c2   :  { %v435_v35 = vsel %vm431_vm2, %v434_v33, %v426_v30 }
 0x3c3   :  { %v438_v39 = vrot.slane %v435_v35, 6 }
 0x3c8   :  { %v410_v37 = vpop.permute.xlu1 %409 }
 0x3c9   :  { %v430_v40 = vsel %vm429_vm1, %v428_v36, %v410_v37 }
 0x3ca   :  { %v432_v41 = vsel %vm431_vm2, %v430_v40, %v414_v38 }
 0x3cb   :  { %v440_v42 = vsel %vm439_vm3, %v432_v41, %v438_v39 }
 0x3cc   :  { %441 = vrot.lane.b32.xlu0 %v440_v42, %s654_s1 }
 0x43e   :  { %v442_v43 = vpop.permute.xlu0 %441 }
 0x43f   :  { %v443_v45 = vrot.slane %v442_v43, 6 }
 0x441   :  { %v444_v46 = vsel %vm274_vm7, %v443_v45, %v442_v43 }
 0x442   :  { %451 = vst.msk [vmem:[%s808_s9] sm:$0x3f] %vm450_vm9, %v444_v46 }
 0x443   :  { %456 = vsyncpa [#allocation3], 1 }
 0x444   :  { %457 = vsyncpa [#allocation5], 1 }
 0x445   :  { %458 = vsyncpa [#allocation8], 1 }
 0x446   :  { %459 = vsyncpa [#allocation11], 1 }

</bundles_post_ra>
